<compile_context>
chip_gen: v5e
topology: v5e:2x2
jax: 0.10.0
libtpu: 0.0.40
codegen_flags: <defaults>
</compile_context>

<pallas_src>
import math

import jax
import jax.numpy as jnp
from jax.experimental import pallas as pl
from jax.experimental.pallas import tpu as pltpu


def _gelu_tanh_kernel(x_ref, o_ref):
    xf = x_ref[...].astype(jnp.float32)
    # tanh-approx GELU, Horner form: inner = x * (c0 + c1 * x^2)
    c0 = jnp.float32(math.sqrt(2.0 / math.pi))
    c1 = jnp.float32(math.sqrt(2.0 / math.pi) * 0.044715)
    x2 = xf * xf
    inner = xf * (c0 + c1 * x2)
    y = jnp.float32(0.5) * xf * (jnp.float32(1.0) + jnp.tanh(inner))
    o_ref[...] = y.astype(o_ref.dtype)


# ~2 MiB per tile; with double-buffered in + out that's ~8 MiB live, well under
# the default scoped VMEM on v5e (16 MiB) and v6e/v7x (32 MiB).
_BLOCK_BYTES = 2 * 1024 * 1024
_LANE_DENSE_COLS = 512  # multiple of 128, >= 512 -> unmasked full-width stores
_VMEM_LIMIT_BYTES = 32 * 1024 * 1024


def gelu_tanh(x):
    """Apply tanh-approximate GELU elementwise via a Pallas TPU kernel."""
    orig_shape = x.shape
    total = 1
    for d in orig_shape:
        total *= d
    if total == 0:
        return x
    itemsize = jnp.dtype(x.dtype).itemsize

    # ---- Build a lane-dense 2D slab -------------------------------------
    padded = False
    if x.ndim >= 2 and orig_shape[-1] % 128 == 0:
        # Last dim already lane-aligned: keep it on lanes.
        cols = orig_shape[-1]
        x2 = x.reshape(-1, cols)
    else:
        # Small / unaligned last dim (or 1D): flatten to a (rows, 512) slab.
        cols = _LANE_DENSE_COLS if total >= _LANE_DENSE_COLS else total
        rows_needed = -(-total // cols)
        pad = rows_needed * cols - total
        xf = x.reshape(-1)
        if pad:
            xf = jnp.pad(xf, (0, pad))
            padded = True
        x2 = xf.reshape(rows_needed, cols)
    rows, cols = x2.shape

    # ---- Tile sizing from a VMEM byte budget -----------------------------
    # Lane tile: multiple of 128 (or the full dim); cap so 8 sublanes fit budget.
    max_tn = max(128, ((_BLOCK_BYTES // (8 * itemsize)) // 128) * 128)
    tn = cols if cols <= max_tn else max_tn
    # Sublane tile: multiple of 8 (or the full dim); fill remaining budget.
    tm_cand = max(8, ((_BLOCK_BYTES // (tn * itemsize)) // 8) * 8)
    tm_cand = min(tm_cand, 1024)
    tm = rows if rows <= tm_cand else tm_cand

    grid = (pl.cdiv(rows, tm), pl.cdiv(cols, tn))

    out = pl.pallas_call(
        _gelu_tanh_kernel,
        out_shape=jax.ShapeDtypeStruct((rows, cols), x2.dtype),
        grid_spec=pltpu.PrefetchScalarGridSpec(
            num_scalar_prefetch=0,
            grid=grid,
            in_specs=[pl.BlockSpec((tm, tn), lambda i, j: (i, j))],
            out_specs=pl.BlockSpec((tm, tn), lambda i, j: (i, j)),
        ),
        compiler_params=pltpu.CompilerParams(
            dimension_semantics=("parallel", "parallel"),
            vmem_limit_bytes=_VMEM_LIMIT_BYTES,
        ),
    )(x2)

    if padded:
        out = out.reshape(-1)[:total]
    return out.reshape(orig_shape)


def _reference_gelu_tanh(x):
    xf = x.astype(jnp.float32)
    c = math.sqrt(2.0 / math.pi)
    y = 0.5 * xf * (1.0 + jnp.tanh(c * (xf + 0.044715 * xf ** 3)))
    return y.astype(x.dtype)


if __name__ == "__main__":
    key = jax.random.PRNGKey(0)

    # Primary small input consistent with the module: (batch=2, seq=8, hidden=32).
    x = jax.random.normal(key, (2, 8, 32), dtype=jnp.float32)
    y = gelu_tanh(x)
    y = jax.block_until_ready(y)
    y_ref = _reference_gelu_tanh(x)
    assert y.shape == x.shape and y.dtype == x.dtype
    assert jnp.allclose(y, y_ref, atol=1e-5, rtol=1e-5)

    # Secondary check exercising the lane-aligned (-1, last_dim) path.
    k2 = jax.random.PRNGKey(1)
    x2 = jax.random.normal(k2, (2, 8, 256), dtype=jnp.float32)
    y2 = jax.block_until_ready(gelu_tanh(x2))
    assert jnp.allclose(y2, _reference_gelu_tanh(x2), atol=1e-5, rtol=1e-5)

    print("KERNEL_OK")
</pallas_src>

<mosaic_0001>
module attributes {stable_mosaic.version = 11 : i64} {
  func.func @_gelu_tanh_kernel(%arg0: i32, %arg1: i32, %arg2: memref<1x512xf32, #tpu.memory_space<vmem>>, %arg3: memref<1x512xf32, #tpu.memory_space<vmem>>) attributes {dimension_semantics = [#tpu.dimension_semantics<parallel>, #tpu.dimension_semantics<parallel>], iteration_bounds = array<i64: 1, 1>, scalar_prefetch = 0 : i64, scratch_operands = 0 : i64, tpu.core_type = #tpu.core_type<tc>, window_params = [{transform_indices = @transform_0, window_bounds = array<i64: 1, 512>}, {transform_indices = @transform_1, window_bounds = array<i64: 1, 512>}]} {
    %c0 = arith.constant 0 : index
    %c0_0 = arith.constant 0 : index
    %0 = vector.load %arg2[%c0, %c0_0] : memref<1x512xf32, #tpu.memory_space<vmem>>, vector<1x512xf32>
    %1 = arith.mulf %0, %0 : vector<1x512xf32>
    %cst = arith.constant 0.0356774069 : f32
    %2 = vector.broadcast %cst : f32 to vector<1x512xf32>
    %3 = arith.mulf %2, %1 : vector<1x512xf32>
    %cst_1 = arith.constant 0.797884583 : f32
    %4 = vector.broadcast %cst_1 : f32 to vector<1x512xf32>
    %5 = arith.addf %4, %3 : vector<1x512xf32>
    %6 = arith.mulf %0, %5 : vector<1x512xf32>
    %cst_2 = arith.constant 5.000000e-01 : f32
    %7 = vector.broadcast %cst_2 : f32 to vector<1x512xf32>
    %8 = arith.mulf %7, %0 : vector<1x512xf32>
    %9 = math.tanh %6 : vector<1x512xf32>
    %cst_3 = arith.constant 1.000000e+00 : f32
    %10 = vector.broadcast %cst_3 : f32 to vector<1x512xf32>
    %11 = arith.addf %10, %9 : vector<1x512xf32>
    %12 = arith.mulf %8, %11 : vector<1x512xf32>
    %c0_4 = arith.constant 0 : index
    %c0_5 = arith.constant 0 : index
    %13 = vector.load %arg3[%c0_4, %c0_5] : memref<1x512xf32, #tpu.memory_space<vmem>>, vector<1x512xf32>
    tpu.vector_store %arg3[%c0_4, %c0_5], %12 {strides = array<i32>} : memref<1x512xf32, #tpu.memory_space<vmem>>, vector<1x512xf32>,
    return
  }
  func.func @transform_0(%arg0: i32, %arg1: i32) -> (i32, i32) {
    %c0_i32 = arith.constant 0 : i32
    return %arg0, %arg1 : i32, i32
  }
  func.func @transform_1(%arg0: i32, %arg1: i32) -> (i32, i32) {
    %c0_i32 = arith.constant 0 : i32
    return %arg0, %arg1 : i32, i32
  }
}

</mosaic_0001>

<bundles_post_ra>
// kernel: tpu_custom_call.1
= control target key start
LH: loop header
LB: loop body
LE: loop exit
PB: predicated region body
PF: predicated region fallthrough
CT: control target
= control target key end

     0   :  { %6 = vsyncpa [#allocation3], 0  ;;  %s128_s0 = inlined_call_operand.hbm [shape: f32[1,512], index: 0, kind: input, shape index: {}]   ;;  %s129_s1 = inlined_call_operand.hbm [shape: f32[1,512], index: 1, kind: output, shape index: {}]  }
   0x1   :  { %7 = vsyncpa [#allocation4], 0  ;;  %s13_s8 = sshll.u32 %s128_s0, 4  ;;  %s110_s9 = smov [#allocation2]   ;;  %s14_s8 = int_to_ptr.hbm [resolvable:$true] %s13_s8 }
   0x2   :  { %s15_s10 = sshll.u32 %s110_s9, 4  ;;  %s16_s10 = int_to_ptr.vmem [resolvable:$true] %s15_s10 }
   0x3   :  { %18 = dma.hbm_to_vmem [thread:$0]  %s14_s8, 64, %s16_s10, [#allocation3]  }
   0x4   :  { %106 = dma.done.wait [#allocation3], 64  }
   0x5   :  { %107 = vsyncadd [#allocation3], 4294967232  ;;  %v23_v0 = vld [vmem:[#allocation2] sm:$0xf]  ;;  %v32_v5 = vlaneseq  ;;  %s111_s11 = smov [#allocation5]   ;;  %s44_s14 = sshll.u32 %s129_s1, 4  ;;  %s45_s14 = int_to_ptr.hbm [resolvable:$true] %s44_s14 }
   0x6   :  { %v24_v1 = vmul.f32 %v23_v0, %v23_v0  ;;  %v28_v6 = vmul.f32 0.5, %v23_v0  ;;  %s42_s12 = sshll.u32 %s111_s11, 4  ;;  %s43_s12 = int_to_ptr.vmem [resolvable:$true] %s42_s12 }
   0x7   :  { %vm34_vm0 = vcmp.lt.s32.totalorder %v32_v5, 512 }
   0x8   :  { %v25_v2 = vmul.f32 0.035677407, %v24_v1 }
   0xa   :  { %v26_v3 = vadd.f32 0.7978846, %v25_v2 }
   0xc   :  { %v27_v4 = vmul.f32 %v26_v3, %v23_v0 }
   0xe   :  { %56 = vtanh.f32 %v27_v4 }
  0x14   :  { %v57_v7 = vpop.eup %56 }
  0x15   :  { %v30_v8 = vadd.f32 1.0, %v57_v7 }
  0x17   :  { %v31_v9 = vmul.f32 %v30_v8, %v28_v6 }
  0x19   :  { %36 = vst.msk [vmem:[#allocation5] sm:$0xf] %vm34_vm0, %v31_v9 }
  0x1a   :  { %47 = dma.vmem_to_hbm [thread:$0]  %s43_s12, 64, %s45_s14, [#allocation4]  }
  0x1b   :  { %108 = dma.done.wait [#allocation4], 64  }
  0x1c   :  { %109 = vsyncadd [#allocation4], 4294967232 }
  0x1d   :  { %52 = vsyncpa [#allocation3], 1 }
  0x1e   :  { %53 = vsyncpa [#allocation4], 1 }

</bundles_post_ra>
